<compile_context>
chip_gen: v7x
topology: tpu7x:2x2x1
jax: 0.10.0
libtpu: 0.0.40
codegen_flags: <defaults>
</compile_context>

<pallas_src>
import functools
from math import floor

import numpy as np
import jax
import jax.numpy as jnp
from jax.experimental import pallas as pl
from jax.experimental.pallas import tpu as pltpu

# Module-fixed conv hyperparameters (from the PyTorch spec).
K1, S1 = 8, 4          # conv1: 8x8 kernel, stride 4, 16 out channels
K2, S2 = 4, 2          # conv2: 4x4 kernel, stride 2, 32 out channels
C1_OUT, C2_OUT = 16, 32


def conv_output_shape(h_w, kernel_size=1, stride=1, pad=0, dilation=1):
    h = floor((h_w[0] + 2 * pad - dilation * (kernel_size - 1) - 1) / stride + 1)
    w = floor((h_w[1] + 2 * pad - dilation * (kernel_size - 1) - 1) / stride + 1)
    return (h, w)


def _vmem():
    # Whole-array blocks (no grid): every operand easily fits VMEM at these shapes.
    return pl.BlockSpec(memory_space=pltpu.MemorySpace.VMEM)


# ---------------------------- fused Pallas kernel ----------------------------

def _fused_kernel(p1_ref, w1_ref, b1_ref, w2_ref, b2_ref, wenc_ref, benc_ref,
                  wh1_ref, bh1_ref, wh2_ref, bh2_ref, o_ref, *,
                  B, n_pos, A, n_pad, tanh_pos, sigmoid_pos, relu_pos, softmax_pos):
    dotf = lambda a, b: jnp.dot(a, b, preferred_element_type=jnp.float32)
    G = n_pos * B                                  # rows per conv2 kernel position

    # conv1: im2col rows pre-ordered (k2, pos, b) by the wrapper.
    # [K2*K2*G, C*K1*K1] bf16 @ [C*K1*K1, 16] bf16 -> f32, +bias, ReLU.
    y1 = jnp.maximum(dotf(p1_ref[...], w1_ref[...]) + b1_ref[...], 0.0)   # [16*G, 16] f32

    # conv2: dense shared weight, accumulated over the 16 static kernel positions.
    # Each slice is a static, 8-row-aligned contiguous slice of y1.
    w2 = w2_ref[...]                                                      # [16*16, 32] bf16
    acc = jnp.zeros((G, C2_OUT), jnp.float32)
    for k in range(K2 * K2):
        acc = acc + dotf(y1[k * G:(k + 1) * G, :].astype(jnp.bfloat16),
                         w2[k * C1_OUT:(k + 1) * C1_OUT, :])
    y2 = jnp.maximum(acc + b2_ref[...], 0.0)                              # [(pos,b), 32] f32

    # encoder Linear + ReLU: NCHW flatten folded into a per-position accumulation
    # against the re-packed [n_pos*32, E] encoder weight.
    wenc = wenc_ref[...]
    E = wenc.shape[1]
    eacc = jnp.zeros((B, E), jnp.float32)
    for p in range(n_pos):
        eacc = eacc + dotf(y2[p * B:(p + 1) * B, :].astype(jnp.bfloat16),
                           wenc[p * C2_OUT:(p + 1) * C2_OUT, :])
    enc = jnp.maximum(eacc + benc_ref[...], 0.0).astype(jnp.bfloat16)     # [B, E]

    # packed heads (mean | var | critic): one [E, 3*inter] dot -> sigmoid ->
    # one block-diagonal [3*inter, n_pad] dot.  Columns: [0:A]=mean logits,
    # [A:2A]=var logits, [2A]=critic, [2A+1:]=zero pad (lane-dense output).
    h = jax.nn.sigmoid(dotf(enc, wh1_ref[...]) + bh1_ref[...]).astype(jnp.bfloat16)
    z = dotf(h, wh2_ref[...]) + bh2_ref[...]                              # [B, n_pad] f32

    # FinalActivation epilogue with trace-time static masks (iota compares).
    col = jax.lax.broadcasted_iota(jnp.int32, (1, n_pad), 1)

    def lmask(positions):
        m = jnp.zeros((1, n_pad), jnp.float32)
        for p in positions:
            m = m + (col == p).astype(jnp.float32)
        return m

    def rmask(lo, hi):
        return ((col >= lo) & (col < hi)).astype(jnp.float32)

    out = rmask(2 * A, 2 * A + 1) * z                                     # critic: identity
    if tanh_pos:
        out = out + lmask(tanh_pos) * jnp.tanh(z)
    # mean sigmoid columns + whole var block share one sigmoid evaluation.
    out = out + (lmask(sigmoid_pos) + rmask(A, 2 * A)) * jax.nn.sigmoid(z)
    if relu_pos:
        out = out + lmask(relu_pos) * jnp.maximum(z, 0.0)
    if softmax_pos:
        # softmax over dim=0 (the BATCH axis, as in the PyTorch FinalActivation).
        zc = z - jnp.max(z, axis=0, keepdims=True)
        ez = jnp.exp(zc)
        out = out + lmask(softmax_pos) * (ez / jnp.sum(ez, axis=0, keepdims=True))
    o_ref[...] = out


# ------------------------------ JAX wrapper ------------------------------

def _im2col_nchw(x, K, S):
    """x: [B, C, H, W] -> [B*Ho*Wo, C*K*K]; rows ordered (b, ho, wo), features (c, kh, kw)."""
    B, C, H, W = x.shape
    Ho = (H - K) // S + 1
    Wo = (W - K) // S + 1
    cols = []
    for kh in range(K):
        for kw in range(K):
            cols.append(x[:, :, kh:kh + S * Ho:S, kw:kw + S * Wo:S])   # [B,C,Ho,Wo]
    p = jnp.stack(cols, axis=2)                     # [B, C, K*K, Ho, Wo]
    p = p.reshape(B, C * K * K, Ho * Wo)
    return p.transpose(0, 2, 1).reshape(B * Ho * Wo, C * K * K)


def make_actor_critic_forward(input_shape, encoding_size, actions_size,
                              tanh_positions, sigmoid_positions, relu_positions):
    """Builds the jitted one-kernel forward. All static config is closed over here."""
    H, W, C = input_shape
    H1, W1 = conv_output_shape((H, W), K1, S1)
    H2, W2 = conv_output_shape((H1, W1), K2, S2)
    n_pos = H2 * W2
    A = actions_size
    n_pad = max(128, ((2 * A + 1 + 127) // 128) * 128)     # lane-dense output width

    listed = list(tanh_positions) + list(sigmoid_positions) + list(relu_positions)
    assert len(listed) <= actions_size, \
        "Number of positions for final activation layer is greater than output size."
    assert len(listed) == len(set(listed)), \
        "tanh/sigmoid/relu position lists must be disjoint."
    soft_pos = tuple(int(i) for i in np.delete(np.arange(A), listed))
    tanh_pos = tuple(int(i) for i in tanh_positions)
    sigm_pos = tuple(int(i) for i in sigmoid_positions)
    relu_pos = tuple(int(i) for i in relu_positions)

    @jax.jit
    def forward(obs, kp):
        """obs: NCHW float32 [B, C, H, W] -> (mean [B,A], var [B,A], td_err [B,1])."""
        B = obs.shape[0]

        # conv1 im2col (wrapper-side XLA), patches in bf16 for the MXU.
        obs_bf = obs.astype(jnp.bfloat16)
        p_all = _im2col_nchw(obs_bf, K1, S1)                      # [B*H1*W1, C*K1*K1]

        # Reorder/duplicate rows into (k2, pos, b) order so conv2 inside the fused
        # kernel only needs static aligned slices (trace-time numpy index math).
        k2 = np.arange(K2 * K2)
        kh2, kw2 = k2 // K2, k2 % K2
        pos = np.arange(n_pos)
        ho2, wo2 = pos // W2, pos % W2
        h1 = S2 * ho2[None, :, None] + kh2[:, None, None]         # [K2*K2, n_pos, 1]
        w1 = S2 * wo2[None, :, None] + kw2[:, None, None]
        b_idx = np.arange(B)[None, None, :]
        row_idx = (b_idx * H1 * W1 + h1 * W1 + w1).reshape(-1)    # [K2*K2*n_pos*B]
        p1 = jnp.take(p_all, jnp.asarray(row_idx, dtype=jnp.int32), axis=0)

        kernel = functools.partial(
            _fused_kernel, B=B, n_pos=n_pos, A=A, n_pad=n_pad,
            tanh_pos=tanh_pos, sigmoid_pos=sigm_pos, relu_pos=relu_pos,
            softmax_pos=soft_pos)

        args = (p1, kp["w1"], kp["b1"], kp["w2"], kp["b2"], kp["wenc"], kp["benc"],
                kp["wh1"], kp["bh1"], kp["wh2"], kp["bh2"])
        out = pl.pallas_call(
            kernel,
            out_shape=jax.ShapeDtypeStruct((B, n_pad), jnp.float32),
            in_specs=[_vmem()] * len(args),
            out_specs=_vmem(),
            compiler_params=pltpu.CompilerParams(vmem_limit_bytes=32 * 1024 * 1024),
        )(*args)

        mean = out[:, :A]
        var = out[:, A:2 * A]
        td = out[:, 2 * A:2 * A + 1]
        return mean, var, td

    return forward


# ------------------------- parameter handling -------------------------

def _linear_params(key, fan_in, fan_out):
    k1, k2 = jax.random.split(key)
    bound = 1.0 / np.sqrt(fan_in)
    w = jax.random.uniform(k1, (fan_out, fan_in), jnp.float32, -bound, bound)  # [out, in]
    b = jax.random.uniform(k2, (fan_out,), jnp.float32, -bound, bound)
    return w, b


def _conv_params(key, in_c, out_c, K):
    k1, k2 = jax.random.split(key)
    fan_in = in_c * K * K
    bound = 1.0 / np.sqrt(fan_in)
    w = jax.random.uniform(k1, (out_c, in_c, K, K), jnp.float32, -bound, bound)  # OIHW
    b = jax.random.uniform(k2, (out_c,), jnp.float32, -bound, bound)
    return w, b


def init_actor_critic(key, input_shape, encoding_size, actions_size):
    H, W, C = input_shape
    inter = int(encoding_size / 2)
    c1hw = conv_output_shape((H, W), K1, S1)
    c2hw = conv_output_shape(c1hw, K2, S2)
    final_flat = c2hw[0] * c2hw[1] * C2_OUT
    keys = jax.random.split(key, 9)
    p = {}
    p["conv1_w"], p["conv1_b"] = _conv_params(keys[0], C, C1_OUT, K1)
    p["conv2_w"], p["conv2_b"] = _conv_params(keys[1], C1_OUT, C2_OUT, K2)
    p["enc_w"], p["enc_b"] = _linear_params(keys[2], final_flat, encoding_size)
    p["am1_w"], p["am1_b"] = _linear_params(keys[3], encoding_size, inter)
    p["am2_w"], p["am2_b"] = _linear_params(keys[4], inter, actions_size)
    p["av1_w"], p["av1_b"] = _linear_params(keys[5], encoding_size, inter)
    p["av2_w"], p["av2_b"] = _linear_params(keys[6], inter, actions_size)
    p["ac1_w"], p["ac1_b"] = _linear_params(keys[7], encoding_size, inter)
    p["ac2_w"], p["ac2_b"] = _linear_params(keys[8], inter, 1)
    return p, final_flat


def _block_diag(blocks):
    rows = sum(b.shape[0] for b in blocks)
    cols = sum(b.shape[1] for b in blocks)
    out = jnp.zeros((rows, cols), blocks[0].dtype)
    r = c = 0
    for b in blocks:
        out = out.at[r:r + b.shape[0], c:c + b.shape[1]].set(b)
        r += b.shape[0]
        c += b.shape[1]
    return out


def prepare_params(params, input_shape, encoding_size, actions_size):
    """All weight re-layouts hoisted out of the hot path (init-time only)."""
    H, W, C = input_shape
    H1, W1 = conv_output_shape((H, W), K1, S1)
    H2, W2 = conv_output_shape((H1, W1), K2, S2)
    n_pos = H2 * W2
    A = actions_size
    E = encoding_size
    n_pad = max(128, ((2 * A + 1 + 127) // 128) * 128)

    kp = {}
    # conv1 weight as [C*K1*K1, 16] (feature order (c, kh, kw)), bf16 for the MXU.
    kp["w1"] = params["conv1_w"].reshape(C1_OUT, -1).T.astype(jnp.bfloat16)
    kp["b1"] = params["conv1_b"][None, :].astype(jnp.float32)

    # conv2 dense shared weight packed per kernel position: rows (k2=(kh2,kw2), ic).
    kp["w2"] = params["conv2_w"].transpose(2, 3, 1, 0).reshape(
        K2 * K2 * C1_OUT, C2_OUT).astype(jnp.bfloat16)                      # [256, 32]
    kp["b2"] = params["conv2_b"][None, :].astype(jnp.float32)

    # encoder weight re-packed per conv2 output position so the NCHW flatten is
    # folded into a per-position accumulation: rows (pos, oc).
    kp["wenc"] = params["enc_w"].reshape(E, C2_OUT, n_pos).transpose(2, 1, 0) \
                                .reshape(n_pos * C2_OUT, E).astype(jnp.bfloat16)
    kp["benc"] = params["enc_b"][None, :].astype(jnp.float32)

    # packed heads (mean | var | critic): one first-layer dot, one block-diag
    # second-layer dot, output padded to a lane-dense [.., n_pad] slab.
    kp["wh1"] = jnp.concatenate(
        [params["am1_w"].T, params["av1_w"].T, params["ac1_w"].T], axis=1
    ).astype(jnp.bfloat16)
    kp["bh1"] = jnp.concatenate(
        [params["am1_b"], params["av1_b"], params["ac1_b"]])[None, :].astype(jnp.float32)
    wh2 = _block_diag([params["am2_w"].T, params["av2_w"].T, params["ac2_w"].T])  # [3*inter, 2A+1]
    kp["wh2"] = jnp.pad(wh2, ((0, 0), (0, n_pad - (2 * A + 1)))).astype(jnp.bfloat16)
    bh2 = jnp.concatenate([params["am2_b"], params["av2_b"], params["ac2_b"]])
    kp["bh2"] = jnp.pad(bh2, (0, n_pad - (2 * A + 1)))[None, :].astype(jnp.float32)
    return kp


# ------------------------- pure-JAX reference -------------------------

def ref_forward(obs, params, final_flat, A, tanh_pos, sigmoid_pos, relu_pos):
    dn = ("NCHW", "OIHW", "NCHW")
    y1 = jax.lax.conv_general_dilated(obs, params["conv1_w"], (S1, S1), "VALID",
                                      dimension_numbers=dn)
    y1 = jnp.maximum(y1 + params["conv1_b"][None, :, None, None], 0.0)
    y2 = jax.lax.conv_general_dilated(y1, params["conv2_w"], (S2, S2), "VALID",
                                      dimension_numbers=dn)
    y2 = jnp.maximum(y2 + params["conv2_b"][None, :, None, None], 0.0)
    flat = y2.reshape(y2.shape[0], final_flat)
    enc = jnp.maximum(flat @ params["enc_w"].T + params["enc_b"], 0.0)

    soft_pos = list(np.delete(np.arange(A), tanh_pos + sigmoid_pos + relu_pos))

    def mask(pos):
        a = np.zeros((1, A), np.float32)
        a[0, pos] = 1.0
        return jnp.asarray(a)

    mt, ms, mr, msm = mask(tanh_pos), mask(sigmoid_pos), mask(relu_pos), mask(soft_pos)
    hm = jax.nn.sigmoid(enc @ params["am1_w"].T + params["am1_b"])
    zm = hm @ params["am2_w"].T + params["am2_b"]
    sm = jax.nn.softmax(zm, axis=0)   # softmax over the batch axis (FinalActivation)
    mean = (mt * jnp.tanh(zm) + ms * jax.nn.sigmoid(zm)
            + mr * jnp.maximum(zm, 0.0) + msm * sm)
    hv = jax.nn.sigmoid(enc @ params["av1_w"].T + params["av1_b"])
    var = jax.nn.sigmoid(hv @ params["av2_w"].T + params["av2_b"])
    hc = jax.nn.sigmoid(enc @ params["ac1_w"].T + params["ac1_b"])
    td = hc @ params["ac2_w"].T + params["ac2_b"]
    return mean, var, td


if __name__ == "__main__":
    B = 2
    input_shape = (32, 32, 4)       # (H, W, C) as in the PyTorch module
    encoding_size = 32
    actions_size = 4
    tanh_positions, sigmoid_positions, relu_positions = [1], [0], []

    key = jax.random.PRNGKey(0)
    k_obs, k_par = jax.random.split(key)
    H, W, C = input_shape
    obs = jax.random.normal(k_obs, (B, C, H, W), jnp.float32)     # NCHW observation

    params, final_flat = init_actor_critic(k_par, input_shape, encoding_size, actions_size)
    kparams = prepare_params(params, input_shape, encoding_size, actions_size)
    forward = make_actor_critic_forward(input_shape, encoding_size, actions_size,
                                        tanh_positions, sigmoid_positions, relu_positions)

    mean, var, td = forward(obs, kparams)
    jax.block_until_ready((mean, var, td))

    r_mean, r_var, r_td = ref_forward(obs, params, final_flat, actions_size,
                                      tanh_positions, sigmoid_positions, relu_positions)
    assert mean.shape == (B, actions_size)
    assert var.shape == (B, actions_size)
    assert td.shape == (B, 1)
    assert jnp.allclose(mean, r_mean, atol=2e-2, rtol=2e-2)
    assert jnp.allclose(var, r_var, atol=2e-2, rtol=2e-2)
    assert jnp.allclose(td, r_td, atol=2e-2, rtol=2e-2)
    print("KERNEL_OK")
</pallas_src>

<mosaic_0001>
module attributes {stable_mosaic.version = 11 : i64} {
  func.func @_fused_kernel(%arg0: memref<128x256xbf16, #tpu.memory_space<vmem>>, %arg1: memref<256x16xbf16, #tpu.memory_space<vmem>>, %arg2: memref<1x16xf32, #tpu.memory_space<vmem>>, %arg3: memref<256x32xbf16, #tpu.memory_space<vmem>>, %arg4: memref<1x32xf32, #tpu.memory_space<vmem>>, %arg5: memref<128x32xbf16, #tpu.memory_space<vmem>>, %arg6: memref<1x32xf32, #tpu.memory_space<vmem>>, %arg7: memref<32x48xbf16, #tpu.memory_space<vmem>>, %arg8: memref<1x48xf32, #tpu.memory_space<vmem>>, %arg9: memref<48x128xbf16, #tpu.memory_space<vmem>>, %arg10: memref<1x128xf32, #tpu.memory_space<vmem>>, %arg11: memref<2x128xf32, #tpu.memory_space<vmem>>) attributes {dimension_semantics = [], scalar_prefetch = 0 : i64, scratch_operands = 0 : i64, tpu.core_type = #tpu.core_type<tc>} {
    %c0 = arith.constant 0 : index
    %c0_0 = arith.constant 0 : index
    %0 = vector.load %arg0[%c0, %c0_0] : memref<128x256xbf16, #tpu.memory_space<vmem>>, vector<128x256xbf16>
    %c0_1 = arith.constant 0 : index
    %c0_2 = arith.constant 0 : index
    %1 = vector.load %arg1[%c0_1, %c0_2] : memref<256x16xbf16, #tpu.memory_space<vmem>>, vector<256x16xbf16>
    %cst = arith.constant dense<0.000000e+00> : vector<128x16xf32>
    %2 = tpu.matmul %0, %1, %cst {dimension_numbers = #tpu.dot_dimension_numbers<[1], [0], [0], [1], [0, 0, 1, 1], [], []>} : vector<128x256xbf16>, vector<256x16xbf16>, vector<128x16xf32> -> vector<128x16xf32>
    %c0_3 = arith.constant 0 : index
    %c0_4 = arith.constant 0 : index
    %3 = vector.load %arg2[%c0_3, %c0_4] : memref<1x16xf32, #tpu.memory_space<vmem>>, vector<1x16xf32>
    %4 = vector.broadcast %3 : vector<1x16xf32> to vector<128x16xf32>
    %5 = arith.addf %2, %4 : vector<128x16xf32>
    %cst_5 = arith.constant 0.000000e+00 : f32
    %6 = vector.broadcast %cst_5 : f32 to vector<128x16xf32>
    %7 = arith.maximumf %5, %6 : vector<128x16xf32>
    %c0_6 = arith.constant 0 : index
    %c0_7 = arith.constant 0 : index
    %8 = vector.load %arg3[%c0_6, %c0_7] : memref<256x32xbf16, #tpu.memory_space<vmem>>, vector<256x32xbf16>
    %cst_8 = arith.constant 0.000000e+00 : f32
    %9 = vector.broadcast %cst_8 : f32 to vector<8x32xf32>
    %10 = vector.extract_strided_slice %7 {offsets = [0, 0], sizes = [8, 16], strides = [1, 1]} : vector<128x16xf32> to vector<8x16xf32>
    %11 = arith.truncf %10 : vector<8x16xf32> to vector<8x16xbf16>
    %12 = vector.extract_strided_slice %8 {offsets = [0, 0], sizes = [16, 32], strides = [1, 1]} : vector<256x32xbf16> to vector<16x32xbf16>
    %cst_9 = arith.constant dense<0.000000e+00> : vector<8x32xf32>
    %13 = tpu.matmul %11, %12, %cst_9 {dimension_numbers = #tpu.dot_dimension_numbers<[1], [0], [0], [1], [0, 0, 1, 1], [], []>} : vector<8x16xbf16>, vector<16x32xbf16>, vector<8x32xf32> -> vector<8x32xf32>
    %14 = arith.addf %9, %13 : vector<8x32xf32>
    %15 = vector.extract_strided_slice %7 {offsets = [8, 0], sizes = [8, 16], strides = [1, 1]} : vector<128x16xf32> to vector<8x16xf32>
    %16 = arith.truncf %15 : vector<8x16xf32> to vector<8x16xbf16>
    %17 = vector.extract_strided_slice %8 {offsets = [16, 0], sizes = [16, 32], strides = [1, 1]} : vector<256x32xbf16> to vector<16x32xbf16>
    %cst_10 = arith.constant dense<0.000000e+00> : vector<8x32xf32>
    %18 = tpu.matmul %16, %17, %cst_10 {dimension_numbers = #tpu.dot_dimension_numbers<[1], [0], [0], [1], [0, 0, 1, 1], [], []>} : vector<8x16xbf16>, vector<16x32xbf16>, vector<8x32xf32> -> vector<8x32xf32>
    %19 = arith.addf %14, %18 : vector<8x32xf32>
    %20 = vector.extract_strided_slice %7 {offsets = [16, 0], sizes = [8, 16], strides = [1, 1]} : vector<128x16xf32> to vector<8x16xf32>
    %21 = arith.truncf %20 : vector<8x16xf32> to vector<8x16xbf16>
    %22 = vector.extract_strided_slice %8 {offsets = [32, 0], sizes = [16, 32], strides = [1, 1]} : vector<256x32xbf16> to vector<16x32xbf16>
    %cst_11 = arith.constant dense<0.000000e+00> : vector<8x32xf32>
    %23 = tpu.matmul %21, %22, %cst_11 {dimension_numbers = #tpu.dot_dimension_numbers<[1], [0], [0], [1], [0, 0, 1, 1], [], []>} : vector<8x16xbf16>, vector<16x32xbf16>, vector<8x32xf32> -> vector<8x32xf32>
    %24 = arith.addf %19, %23 : vector<8x32xf32>
    %25 = vector.extract_strided_slice %7 {offsets = [24, 0], sizes = [8, 16], strides = [1, 1]} : vector<128x16xf32> to vector<8x16xf32>
    %26 = arith.truncf %25 : vector<8x16xf32> to vector<8x16xbf16>
    %27 = vector.extract_strided_slice %8 {offsets = [48, 0], sizes = [16, 32], strides = [1, 1]} : vector<256x32xbf16> to vector<16x32xbf16>
    %cst_12 = arith.constant dense<0.000000e+00> : vector<8x32xf32>
    %28 = tpu.matmul %26, %27, %cst_12 {dimension_numbers = #tpu.dot_dimension_numbers<[1], [0], [0], [1], [0, 0, 1, 1], [], []>} : vector<8x16xbf16>, vector<16x32xbf16>, vector<8x32xf32> -> vector<8x32xf32>
    %29 = arith.addf %24, %28 : vector<8x32xf32>
    %30 = vector.extract_strided_slice %7 {offsets = [32, 0], sizes = [8, 16], strides = [1, 1]} : vector<128x16xf32> to vector<8x16xf32>
    %31 = arith.truncf %30 : vector<8x16xf32> to vector<8x16xbf16>
    %32 = vector.extract_strided_slice %8 {offsets = [64, 0], sizes = [16, 32], strides = [1, 1]} : vector<256x32xbf16> to vector<16x32xbf16>
    %cst_13 = arith.constant dense<0.000000e+00> : vector<8x32xf32>
    %33 = tpu.matmul %31, %32, %cst_13 {dimension_numbers = #tpu.dot_dimension_numbers<[1], [0], [0], [1], [0, 0, 1, 1], [], []>} : vector<8x16xbf16>, vector<16x32xbf16>, vector<8x32xf32> -> vector<8x32xf32>
    %34 = arith.addf %29, %33 : vector<8x32xf32>
    %35 = vector.extract_strided_slice %7 {offsets = [40, 0], sizes = [8, 16], strides = [1, 1]} : vector<128x16xf32> to vector<8x16xf32>
    %36 = arith.truncf %35 : vector<8x16xf32> to vector<8x16xbf16>
    %37 = vector.extract_strided_slice %8 {offsets = [80, 0], sizes = [16, 32], strides = [1, 1]} : vector<256x32xbf16> to vector<16x32xbf16>
    %cst_14 = arith.constant dense<0.000000e+00> : vector<8x32xf32>
    %38 = tpu.matmul %36, %37, %cst_14 {dimension_numbers = #tpu.dot_dimension_numbers<[1], [0], [0], [1], [0, 0, 1, 1], [], []>} : vector<8x16xbf16>, vector<16x32xbf16>, vector<8x32xf32> -> vector<8x32xf32>
    %39 = arith.addf %34, %38 : vector<8x32xf32>
    %40 = vector.extract_strided_slice %7 {offsets = [48, 0], sizes = [8, 16], strides = [1, 1]} : vector<128x16xf32> to vector<8x16xf32>
    %41 = arith.truncf %40 : vector<8x16xf32> to vector<8x16xbf16>
    %42 = vector.extract_strided_slice %8 {offsets = [96, 0], sizes = [16, 32], strides = [1, 1]} : vector<256x32xbf16> to vector<16x32xbf16>
    %cst_15 = arith.constant dense<0.000000e+00> : vector<8x32xf32>
    %43 = tpu.matmul %41, %42, %cst_15 {dimension_numbers = #tpu.dot_dimension_numbers<[1], [0], [0], [1], [0, 0, 1, 1], [], []>} : vector<8x16xbf16>, vector<16x32xbf16>, vector<8x32xf32> -> vector<8x32xf32>
    %44 = arith.addf %39, %43 : vector<8x32xf32>
    %45 = vector.extract_strided_slice %7 {offsets = [56, 0], sizes = [8, 16], strides = [1, 1]} : vector<128x16xf32> to vector<8x16xf32>
    %46 = arith.truncf %45 : vector<8x16xf32> to vector<8x16xbf16>
    %47 = vector.extract_strided_slice %8 {offsets = [112, 0], sizes = [16, 32], strides = [1, 1]} : vector<256x32xbf16> to vector<16x32xbf16>
    %cst_16 = arith.constant dense<0.000000e+00> : vector<8x32xf32>
    %48 = tpu.matmul %46, %47, %cst_16 {dimension_numbers = #tpu.dot_dimension_numbers<[1], [0], [0], [1], [0, 0, 1, 1], [], []>} : vector<8x16xbf16>, vector<16x32xbf16>, vector<8x32xf32> -> vector<8x32xf32>
    %49 = arith.addf %44, %48 : vector<8x32xf32>
    %50 = vector.extract_strided_slice %7 {offsets = [64, 0], sizes = [8, 16], strides = [1, 1]} : vector<128x16xf32> to vector<8x16xf32>
    %51 = arith.truncf %50 : vector<8x16xf32> to vector<8x16xbf16>
    %52 = vector.extract_strided_slice %8 {offsets = [128, 0], sizes = [16, 32], strides = [1, 1]} : vector<256x32xbf16> to vector<16x32xbf16>
    %cst_17 = arith.constant dense<0.000000e+00> : vector<8x32xf32>
    %53 = tpu.matmul %51, %52, %cst_17 {dimension_numbers = #tpu.dot_dimension_numbers<[1], [0], [0], [1], [0, 0, 1, 1], [], []>} : vector<8x16xbf16>, vector<16x32xbf16>, vector<8x32xf32> -> vector<8x32xf32>
    %54 = arith.addf %49, %53 : vector<8x32xf32>
    %55 = vector.extract_strided_slice %7 {offsets = [72, 0], sizes = [8, 16], strides = [1, 1]} : vector<128x16xf32> to vector<8x16xf32>
    %56 = arith.truncf %55 : vector<8x16xf32> to vector<8x16xbf16>
    %57 = vector.extract_strided_slice %8 {offsets = [144, 0], sizes = [16, 32], strides = [1, 1]} : vector<256x32xbf16> to vector<16x32xbf16>
    %cst_18 = arith.constant dense<0.000000e+00> : vector<8x32xf32>
    %58 = tpu.matmul %56, %57, %cst_18 {dimension_numbers = #tpu.dot_dimension_numbers<[1], [0], [0], [1], [0, 0, 1, 1], [], []>} : vector<8x16xbf16>, vector<16x32xbf16>, vector<8x32xf32> -> vector<8x32xf32>
    %59 = arith.addf %54, %58 : vector<8x32xf32>
    %60 = vector.extract_strided_slice %7 {offsets = [80, 0], sizes = [8, 16], strides = [1, 1]} : vector<128x16xf32> to vector<8x16xf32>
    %61 = arith.truncf %60 : vector<8x16xf32> to vector<8x16xbf16>
    %62 = vector.extract_strided_slice %8 {offsets = [160, 0], sizes = [16, 32], strides = [1, 1]} : vector<256x32xbf16> to vector<16x32xbf16>
    %cst_19 = arith.constant dense<0.000000e+00> : vector<8x32xf32>
    %63 = tpu.matmul %61, %62, %cst_19 {dimension_numbers = #tpu.dot_dimension_numbers<[1], [0], [0], [1], [0, 0, 1, 1], [], []>} : vector<8x16xbf16>, vector<16x32xbf16>, vector<8x32xf32> -> vector<8x32xf32>
    %64 = arith.addf %59, %63 : vector<8x32xf32>
    %65 = vector.extract_strided_slice %7 {offsets = [88, 0], sizes = [8, 16], strides = [1, 1]} : vector<128x16xf32> to vector<8x16xf32>
    %66 = arith.truncf %65 : vector<8x16xf32> to vector<8x16xbf16>
    %67 = vector.extract_strided_slice %8 {offsets = [176, 0], sizes = [16, 32], strides = [1, 1]} : vector<256x32xbf16> to vector<16x32xbf16>
    %cst_20 = arith.constant dense<0.000000e+00> : vector<8x32xf32>
    %68 = tpu.matmul %66, %67, %cst_20 {dimension_numbers = #tpu.dot_dimension_numbers<[1], [0], [0], [1], [0, 0, 1, 1], [], []>} : vector<8x16xbf16>, vector<16x32xbf16>, vector<8x32xf32> -> vector<8x32xf32>
    %69 = arith.addf %64, %68 : vector<8x32xf32>
    %70 = vector.extract_strided_slice %7 {offsets = [96, 0], sizes = [8, 16], strides = [1, 1]} : vector<128x16xf32> to vector<8x16xf32>
    %71 = arith.truncf %70 : vector<8x16xf32> to vector<8x16xbf16>
    %72 = vector.extract_strided_slice %8 {offsets = [192, 0], sizes = [16, 32], strides = [1, 1]} : vector<256x32xbf16> to vector<16x32xbf16>
    %cst_21 = arith.constant dense<0.000000e+00> : vector<8x32xf32>
    %73 = tpu.matmul %71, %72, %cst_21 {dimension_numbers = #tpu.dot_dimension_numbers<[1], [0], [0], [1], [0, 0, 1, 1], [], []>} : vector<8x16xbf16>, vector<16x32xbf16>, vector<8x32xf32> -> vector<8x32xf32>
    %74 = arith.addf %69, %73 : vector<8x32xf32>
    %75 = vector.extract_strided_slice %7 {offsets = [104, 0], sizes = [8, 16], strides = [1, 1]} : vector<128x16xf32> to vector<8x16xf32>
    %76 = arith.truncf %75 : vector<8x16xf32> to vector<8x16xbf16>
    %77 = vector.extract_strided_slice %8 {offsets = [208, 0], sizes = [16, 32], strides = [1, 1]} : vector<256x32xbf16> to vector<16x32xbf16>
    %cst_22 = arith.constant dense<0.000000e+00> : vector<8x32xf32>
    %78 = tpu.matmul %76, %77, %cst_22 {dimension_numbers = #tpu.dot_dimension_numbers<[1], [0], [0], [1], [0, 0, 1, 1], [], []>} : vector<8x16xbf16>, vector<16x32xbf16>, vector<8x32xf32> -> vector<8x32xf32>
    %79 = arith.addf %74, %78 : vector<8x32xf32>
    %80 = vector.extract_strided_slice %7 {offsets = [112, 0], sizes = [8, 16], strides = [1, 1]} : vector<128x16xf32> to vector<8x16xf32>
    %81 = arith.truncf %80 : vector<8x16xf32> to vector<8x16xbf16>
    %82 = vector.extract_strided_slice %8 {offsets = [224, 0], sizes = [16, 32], strides = [1, 1]} : vector<256x32xbf16> to vector<16x32xbf16>
    %cst_23 = arith.constant dense<0.000000e+00> : vector<8x32xf32>
    %83 = tpu.matmul %81, %82, %cst_23 {dimension_numbers = #tpu.dot_dimension_numbers<[1], [0], [0], [1], [0, 0, 1, 1], [], []>} : vector<8x16xbf16>, vector<16x32xbf16>, vector<8x32xf32> -> vector<8x32xf32>
    %84 = arith.addf %79, %83 : vector<8x32xf32>
    %85 = vector.extract_strided_slice %7 {offsets = [120, 0], sizes = [8, 16], strides = [1, 1]} : vector<128x16xf32> to vector<8x16xf32>
    %86 = arith.truncf %85 : vector<8x16xf32> to vector<8x16xbf16>
    %87 = vector.extract_strided_slice %8 {offsets = [240, 0], sizes = [16, 32], strides = [1, 1]} : vector<256x32xbf16> to vector<16x32xbf16>
    %cst_24 = arith.constant dense<0.000000e+00> : vector<8x32xf32>
    %88 = tpu.matmul %86, %87, %cst_24 {dimension_numbers = #tpu.dot_dimension_numbers<[1], [0], [0], [1], [0, 0, 1, 1], [], []>} : vector<8x16xbf16>, vector<16x32xbf16>, vector<8x32xf32> -> vector<8x32xf32>
    %89 = arith.addf %84, %88 : vector<8x32xf32>
    %c0_25 = arith.constant 0 : index
    %c0_26 = arith.constant 0 : index
    %90 = vector.load %arg4[%c0_25, %c0_26] : memref<1x32xf32, #tpu.memory_space<vmem>>, vector<1x32xf32>
    %91 = vector.broadcast %90 : vector<1x32xf32> to vector<8x32xf32>
    %92 = arith.addf %89, %91 : vector<8x32xf32>
    %cst_27 = arith.constant 0.000000e+00 : f32
    %93 = vector.broadcast %cst_27 : f32 to vector<8x32xf32>
    %94 = arith.maximumf %92, %93 : vector<8x32xf32>
    %c0_28 = arith.constant 0 : index
    %c0_29 = arith.constant 0 : index
    %95 = vector.load %arg5[%c0_28, %c0_29] : memref<128x32xbf16, #tpu.memory_space<vmem>>, vector<128x32xbf16>
    %cst_30 = arith.constant 0.000000e+00 : f32
    %96 = vector.broadcast %cst_30 : f32 to vector<2x32xf32>
    %97 = vector.extract_strided_slice %94 {offsets = [0, 0], sizes = [2, 32], strides = [1, 1]} : vector<8x32xf32> to vector<2x32xf32>
    %98 = arith.truncf %97 : vector<2x32xf32> to vector<2x32xbf16>
    %99 = vector.extract_strided_slice %95 {offsets = [0, 0], sizes = [32, 32], strides = [1, 1]} : vector<128x32xbf16> to vector<32x32xbf16>
    %cst_31 = arith.constant dense<0.000000e+00> : vector<2x32xf32>
    %100 = tpu.matmul %98, %99, %cst_31 {dimension_numbers = #tpu.dot_dimension_numbers<[1], [0], [0], [1], [0, 0, 1, 1], [], []>} : vector<2x32xbf16>, vector<32x32xbf16>, vector<2x32xf32> -> vector<2x32xf32>
    %101 = arith.addf %96, %100 : vector<2x32xf32>
    %102 = vector.extract_strided_slice %94 {offsets = [2, 0], sizes = [2, 32], strides = [1, 1]} : vector<8x32xf32> to vector<2x32xf32>
    %103 = arith.truncf %102 : vector<2x32xf32> to vector<2x32xbf16>
    %104 = vector.extract_strided_slice %95 {offsets = [32, 0], sizes = [32, 32], strides = [1, 1]} : vector<128x32xbf16> to vector<32x32xbf16>
    %cst_32 = arith.constant dense<0.000000e+00> : vector<2x32xf32>
    %105 = tpu.matmul %103, %104, %cst_32 {dimension_numbers = #tpu.dot_dimension_numbers<[1], [0], [0], [1], [0, 0, 1, 1], [], []>} : vector<2x32xbf16>, vector<32x32xbf16>, vector<2x32xf32> -> vector<2x32xf32>
    %106 = arith.addf %101, %105 : vector<2x32xf32>
    %107 = vector.extract_strided_slice %94 {offsets = [4, 0], sizes = [2, 32], strides = [1, 1]} : vector<8x32xf32> to vector<2x32xf32>
    %108 = arith.truncf %107 : vector<2x32xf32> to vector<2x32xbf16>
    %109 = vector.extract_strided_slice %95 {offsets = [64, 0], sizes = [32, 32], strides = [1, 1]} : vector<128x32xbf16> to vector<32x32xbf16>
    %cst_33 = arith.constant dense<0.000000e+00> : vector<2x32xf32>
    %110 = tpu.matmul %108, %109, %cst_33 {dimension_numbers = #tpu.dot_dimension_numbers<[1], [0], [0], [1], [0, 0, 1, 1], [], []>} : vector<2x32xbf16>, vector<32x32xbf16>, vector<2x32xf32> -> vector<2x32xf32>
    %111 = arith.addf %106, %110 : vector<2x32xf32>
    %112 = vector.extract_strided_slice %94 {offsets = [6, 0], sizes = [2, 32], strides = [1, 1]} : vector<8x32xf32> to vector<2x32xf32>
    %113 = arith.truncf %112 : vector<2x32xf32> to vector<2x32xbf16>
    %114 = vector.extract_strided_slice %95 {offsets = [96, 0], sizes = [32, 32], strides = [1, 1]} : vector<128x32xbf16> to vector<32x32xbf16>
    %cst_34 = arith.constant dense<0.000000e+00> : vector<2x32xf32>
    %115 = tpu.matmul %113, %114, %cst_34 {dimension_numbers = #tpu.dot_dimension_numbers<[1], [0], [0], [1], [0, 0, 1, 1], [], []>} : vector<2x32xbf16>, vector<32x32xbf16>, vector<2x32xf32> -> vector<2x32xf32>
    %116 = arith.addf %111, %115 : vector<2x32xf32>
    %c0_35 = arith.constant 0 : index
    %c0_36 = arith.constant 0 : index
    %117 = vector.load %arg6[%c0_35, %c0_36] : memref<1x32xf32, #tpu.memory_space<vmem>>, vector<1x32xf32>
    %118 = vector.broadcast %117 : vector<1x32xf32> to vector<2x32xf32>
    %119 = arith.addf %116, %118 : vector<2x32xf32>
    %cst_37 = arith.constant 0.000000e+00 : f32
    %120 = vector.broadcast %cst_37 : f32 to vector<2x32xf32>
    %121 = arith.maximumf %119, %120 : vector<2x32xf32>
    %122 = arith.truncf %121 : vector<2x32xf32> to vector<2x32xbf16>
    %c0_38 = arith.constant 0 : index
    %c0_39 = arith.constant 0 : index
    %123 = vector.load %arg7[%c0_38, %c0_39] : memref<32x48xbf16, #tpu.memory_space<vmem>>, vector<32x48xbf16>
    %cst_40 = arith.constant dense<0.000000e+00> : vector<2x48xf32>
    %124 = tpu.matmul %122, %123, %cst_40 {dimension_numbers = #tpu.dot_dimension_numbers<[1], [0], [0], [1], [0, 0, 1, 1], [], []>} : vector<2x32xbf16>, vector<32x48xbf16>, vector<2x48xf32> -> vector<2x48xf32>
    %c0_41 = arith.constant 0 : index
    %c0_42 = arith.constant 0 : index
    %125 = vector.load %arg8[%c0_41, %c0_42] : memref<1x48xf32, #tpu.memory_space<vmem>>, vector<1x48xf32>
    %126 = vector.broadcast %125 : vector<1x48xf32> to vector<2x48xf32>
    %127 = arith.addf %124, %126 : vector<2x48xf32>
    %128 = arith.negf %127 : vector<2x48xf32>
    %129 = math.exp %128 : vector<2x48xf32>
    %cst_43 = arith.constant 1.000000e+00 : f32
    %130 = vector.broadcast %cst_43 : f32 to vector<2x48xf32>
    %131 = arith.addf %130, %129 : vector<2x48xf32>
    %132 = arith.divf %130, %131 : vector<2x48xf32>
    %133 = arith.truncf %132 : vector<2x48xf32> to vector<2x48xbf16>
    %c0_44 = arith.constant 0 : index
    %c0_45 = arith.constant 0 : index
    %134 = vector.load %arg9[%c0_44, %c0_45] : memref<48x128xbf16, #tpu.memory_space<vmem>>, vector<48x128xbf16>
    %cst_46 = arith.constant dense<0.000000e+00> : vector<2x128xf32>
    %135 = tpu.matmul %133, %134, %cst_46 {dimension_numbers = #tpu.dot_dimension_numbers<[1], [0], [0], [1], [0, 0, 1, 1], [], []>} : vector<2x48xbf16>, vector<48x128xbf16>, vector<2x128xf32> -> vector<2x128xf32>
    %c0_47 = arith.constant 0 : index
    %c0_48 = arith.constant 0 : index
    %136 = vector.load %arg10[%c0_47, %c0_48] : memref<1x128xf32, #tpu.memory_space<vmem>>, vector<1x128xf32>
    %137 = vector.broadcast %136 : vector<1x128xf32> to vector<2x128xf32>
    %138 = arith.addf %135, %137 : vector<2x128xf32>
    %139 = tpu.iota {dimensions = array<i32: 1>} : vector<1x128xi32>
    %c8_i32 = arith.constant 8 : i32
    %140 = vector.broadcast %c8_i32 : i32 to vector<1x128xi32>
    %141 = arith.cmpi sge, %139, %140 : vector<1x128xi32>
    %c9_i32 = arith.constant 9 : i32
    %142 = vector.broadcast %c9_i32 : i32 to vector<1x128xi32>
    %143 = arith.cmpi slt, %139, %142 : vector<1x128xi32>
    %144 = arith.andi %141, %143 : vector<1x128xi1>
    %145 = arith.extui %144 : vector<1x128xi1> to vector<1x128xi32>
    %146 = arith.sitofp %145 : vector<1x128xi32> to vector<1x128xf32>
    %147 = vector.broadcast %146 : vector<1x128xf32> to vector<2x128xf32>
    %148 = arith.mulf %147, %138 : vector<2x128xf32>
    %cst_49 = arith.constant 0.000000e+00 : f32
    %149 = vector.broadcast %cst_49 : f32 to vector<1x128xf32>
    %c1_i32 = arith.constant 1 : i32
    %150 = vector.broadcast %c1_i32 : i32 to vector<1x128xi32>
    %151 = arith.cmpi eq, %139, %150 : vector<1x128xi32>
    %152 = arith.extui %151 : vector<1x128xi1> to vector<1x128xi32>
    %153 = arith.sitofp %152 : vector<1x128xi32> to vector<1x128xf32>
    %154 = arith.addf %149, %153 : vector<1x128xf32>
    %155 = math.tanh %138 : vector<2x128xf32>
    %156 = vector.broadcast %154 : vector<1x128xf32> to vector<2x128xf32>
    %157 = arith.mulf %156, %155 : vector<2x128xf32>
    %158 = arith.addf %148, %157 : vector<2x128xf32>
    %cst_50 = arith.constant 0.000000e+00 : f32
    %159 = vector.broadcast %cst_50 : f32 to vector<1x128xf32>
    %c0_i32 = arith.constant 0 : i32
    %160 = vector.broadcast %c0_i32 : i32 to vector<1x128xi32>
    %161 = arith.cmpi eq, %139, %160 : vector<1x128xi32>
    %162 = arith.extui %161 : vector<1x128xi1> to vector<1x128xi32>
    %163 = arith.sitofp %162 : vector<1x128xi32> to vector<1x128xf32>
    %164 = arith.addf %159, %163 : vector<1x128xf32>
    %c4_i32 = arith.constant 4 : i32
    %165 = vector.broadcast %c4_i32 : i32 to vector<1x128xi32>
    %166 = arith.cmpi sge, %139, %165 : vector<1x128xi32>
    %c8_i32_51 = arith.constant 8 : i32
    %167 = vector.broadcast %c8_i32_51 : i32 to vector<1x128xi32>
    %168 = arith.cmpi slt, %139, %167 : vector<1x128xi32>
    %169 = arith.andi %166, %168 : vector<1x128xi1>
    %170 = arith.extui %169 : vector<1x128xi1> to vector<1x128xi32>
    %171 = arith.sitofp %170 : vector<1x128xi32> to vector<1x128xf32>
    %172 = arith.addf %164, %171 : vector<1x128xf32>
    %173 = arith.negf %138 : vector<2x128xf32>
    %174 = math.exp %173 : vector<2x128xf32>
    %cst_52 = arith.constant 1.000000e+00 : f32
    %175 = vector.broadcast %cst_52 : f32 to vector<2x128xf32>
    %176 = arith.addf %175, %174 : vector<2x128xf32>
    %177 = arith.divf %175, %176 : vector<2x128xf32>
    %178 = vector.broadcast %172 : vector<1x128xf32> to vector<2x128xf32>
    %179 = arith.mulf %178, %177 : vector<2x128xf32>
    %180 = arith.addf %158, %179 : vector<2x128xf32>
    %cst_53 = arith.constant dense<0xFF800000> : vector<128xf32>
    %181 = vector.multi_reduction <maximumf>, %138, %cst_53 [0] : vector<2x128xf32> to vector<128xf32>
    %182 = vector.shape_cast %181 : vector<128xf32> to vector<1x128xf32>
    %183 = vector.broadcast %182 : vector<1x128xf32> to vector<2x128xf32>
    %184 = arith.subf %138, %183 : vector<2x128xf32>
    %185 = math.exp %184 : vector<2x128xf32>
    %cst_54 = arith.constant 0.000000e+00 : f32
    %186 = vector.broadcast %cst_54 : f32 to vector<1x128xf32>
    %c2_i32 = arith.constant 2 : i32
    %187 = vector.broadcast %c2_i32 : i32 to vector<1x128xi32>
    %188 = arith.cmpi eq, %139, %187 : vector<1x128xi32>
    %189 = arith.extui %188 : vector<1x128xi1> to vector<1x128xi32>
    %190 = arith.sitofp %189 : vector<1x128xi32> to vector<1x128xf32>
    %191 = arith.addf %186, %190 : vector<1x128xf32>
    %c3_i32 = arith.constant 3 : i32
    %192 = vector.broadcast %c3_i32 : i32 to vector<1x128xi32>
    %193 = arith.cmpi eq, %139, %192 : vector<1x128xi32>
    %194 = arith.extui %193 : vector<1x128xi1> to vector<1x128xi32>
    %195 = arith.sitofp %194 : vector<1x128xi32> to vector<1x128xf32>
    %196 = arith.addf %191, %195 : vector<1x128xf32>
    %cst_55 = arith.constant dense<0.000000e+00> : vector<128xf32>
    %197 = vector.multi_reduction <add>, %185, %cst_55 [0] : vector<2x128xf32> to vector<128xf32>
    %198 = vector.shape_cast %197 : vector<128xf32> to vector<1x128xf32>
    %199 = vector.broadcast %198 : vector<1x128xf32> to vector<2x128xf32>
    %200 = arith.divf %185, %199 : vector<2x128xf32>
    %201 = vector.broadcast %196 : vector<1x128xf32> to vector<2x128xf32>
    %202 = arith.mulf %201, %200 : vector<2x128xf32>
    %203 = arith.addf %180, %202 : vector<2x128xf32>
    %c0_56 = arith.constant 0 : index
    %c0_57 = arith.constant 0 : index
    %204 = vector.load %arg11[%c0_56, %c0_57] : memref<2x128xf32, #tpu.memory_space<vmem>>, vector<2x128xf32>
    tpu.vector_store %arg11[%c0_56, %c0_57], %203 {strides = array<i32>} : memref<2x128xf32, #tpu.memory_space<vmem>>, vector<2x128xf32>,
    return
  }
}

</mosaic_0001>

<bundles_post_ra>
// kernel: forward.1
= control target key start
LH: loop header
LB: loop body
LE: loop exit
PB: predicated region body
PF: predicated region fallthrough
CT: control target
= control target key end

     0   :  { %v2151_v33 = vmov 0.0   ;;  %vm2152_vm0 = vmmov 0   ;;  %vm423_vm1 = vcmask 130048   ;;  %vm1270_vm2 = vcmask 261120   ;;  %s2549_s1 = inlined_call_operand.vmem [shape: bf16[256,16], index: 1, kind: input, shape index: {}]   ;;  %s2550_s0 = inlined_call_operand.vmem [shape: bf16[128,256], index: 0, kind: input, shape index: {}]   ;;  %s2551_s3 = inlined_call_operand.vmem [shape: bf16[256,32], index: 3, kind: input, shape index: {}]   ;;  %s2552_s2 = inlined_call_operand.vmem [shape: f32[1,16], index: 2, kind: input, shape index: {}]   ;;  %s2553_s5 = inlined_call_operand.vmem [shape: bf16[128,32], index: 5, kind: input, shape index: {}]   ;;  %s2554_s4 = inlined_call_operand.vmem [shape: f32[1,32], index: 4, kind: input, shape index: {}]   ;;  %s2555_s7 = inlined_call_operand.vmem [shape: bf16[32,48], index: 7, kind: input, shape index: {}]   ;;  %s2556_s6 = inlined_call_operand.vmem [shape: f32[1,32], index: 6, kind: input, shape index: {}]   ;;  %s2557_s9 = inlined_call_operand.vmem [shape: bf16[48,128], index: 9, kind: input, shape index: {}]   ;;  %s2558_s8 = inlined_call_operand.vmem [shape: f32[1,48], index: 8, kind: input, shape index: {}]   ;;  %s2559_s10 = inlined_call_operand.vmem [shape: f32[1,128], index: 10, kind: input, shape index: {}]   ;;  %s2560_s11 = inlined_call_operand.vmem [shape: f32[2,128], index: 11, kind: output, shape index: {}]  }
   0x1   :  { %v2068_v0 = vld [vmem:[%s2549_s1 + $0x40] sm:$0xff]   ;;  %v2070_v2 = vld [vmem:[%s2549_s1 + $0x48] sm:$0xff]   ;;  %v2072_v4 = vld [vmem:[%s2549_s1 + $0x50] sm:$0xff]   ;;  %1920 = vmatprep.subr.bf16.mxu1 %v2151_v33  ;;  %1922 = vmatprep.mubr.msk.bf16.mxu1 %vm2152_vm0, %v2151_v33  ;;  %vm1597_vm3 = vcmask 392192   ;;  %vm1674_vm4 = vcmask 1041408  }
   0x2   :  { %v2069_v1 = vld [vmem:[%s2549_s1] sm:$0xff]   ;;  %1805 = vmatprep.subr.bf16.mxu0 %v2068_v0  ;;  %v2071_v3 = vld [vmem:[%s2549_s1 + $0x8] sm:$0xff]   ;;  %v2073_v5 = vld [vmem:[%s2549_s1 + $0x10] sm:$0xff]  }
   0x3   :  { %1806 = vmatpush3.bf16.msra.mxu0 %v2069_v1  ;;  %v2074_v6 = vld [vmem:[%s2549_s1 + $0x58] sm:$0xff]   ;;  %v2076_v8 = vld [vmem:[%s2549_s1 + $0x60] sm:$0xff]   ;;  %v2078_v10 = vld [vmem:[%s2549_s1 + $0x68] sm:$0xff]  }
   0x4   :  { %1807 = vmatprep.subr.bf16.mxu0 %v2070_v2  ;;  %v2075_v7 = vld [vmem:[%s2549_s1 + $0x18] sm:$0xff]   ;;  %v2077_v9 = vld [vmem:[%s2549_s1 + $0x20] sm:$0xff]   ;;  %v2079_v12 = vld [vmem:[%s2549_s1 + $0x28] sm:$0xff]  }
   0x5   :  { %v2086_v11 = vld [vmem:[%s2550_s0 + $0x4] ss:$8 sps:$4 sm:$0xff]   ;;  %v2080_v13 = vld [vmem:[%s2549_s1 + $0x70] sm:$0xff]   ;;  %v2082_v15 = vld [vmem:[%s2549_s1 + $0x78] sm:$0xff]  }
   0x6   :  { %302 = vmatprep.mubr.bf16.mxu0 %v2086_v11  ;;  %v2081_v14 = vld [vmem:[%s2549_s1 + $0x30] sm:$0xff]   ;;  %v2083_v16 = vld [vmem:[%s2549_s1 + $0x38] sm:$0xff]   ;;  %v2084_v17 = vld [vmem:[%s2550_s0] ss:$8 sps:$4 sm:$0xff]  }
   0x7   :  { %1808 = vmatpush3.bf16.msra.mxu0 %v2071_v3  ;;  %v2087_v18 = vld [vmem:[%s2550_s0 + $0x14] ss:$8 sps:$4 sm:$0xff]   ;;  %v2089_v19 = vld [vmem:[%s2550_s0 + $0x10] ss:$8 sps:$4 sm:$0xff]   ;;  %v2090_v20 = vld [vmem:[%s2550_s0 + $0x24] ss:$8 sps:$4 sm:$0xff]  }
   0x8   :  { %1809 = vmatprep.subr.bf16.mxu0 %v2072_v4  ;;  %v2092_v21 = vld [vmem:[%s2550_s0 + $0x20] ss:$8 sps:$4 sm:$0xff]   ;;  %v2093_v22 = vld [vmem:[%s2550_s0 + $0x34] ss:$8 sps:$4 sm:$0xff]   ;;  %v2095_v23 = vld [vmem:[%s2550_s0 + $0x30] ss:$8 sps:$4 sm:$0xff]  }
   0x9   :  { %v2096_v24 = vld [vmem:[%s2550_s0 + $0x44] ss:$8 sps:$4 sm:$0xff]   ;;  %v2098_v25 = vld [vmem:[%s2550_s0 + $0x40] ss:$8 sps:$4 sm:$0xff]   ;;  %v2099_v26 = vld [vmem:[%s2550_s0 + $0x54] ss:$8 sps:$4 sm:$0xff]  }
   0xa   :  { %v2101_v27 = vld [vmem:[%s2550_s0 + $0x50] ss:$8 sps:$4 sm:$0xff]   ;;  %v2102_v28 = vld [vmem:[%s2550_s0 + $0x64] ss:$8 sps:$4 sm:$0xff]   ;;  %v2104_v29 = vld [vmem:[%s2550_s0 + $0x60] ss:$8 sps:$4 sm:$0xff]  }
   0xb   :  { %1810 = vmatpush3.bf16.msra.mxu0 %v2073_v5  ;;  %v2105_v30 = vld [vmem:[%s2550_s0 + $0x74] ss:$8 sps:$4 sm:$0xff]   ;;  %v2107_v31 = vld [vmem:[%s2550_s0 + $0x70] ss:$8 sps:$4 sm:$0xff]   ;;  %v2108_v32 = vld [vmem:[%s2551_s3 + $0x8] sm:$0xff]  }
   0xc   :  { %1811 = vmatprep.subr.bf16.mxu0 %v2074_v6  ;;  %1921 = vmatpush3.bf16.msra.mxu1 %v2108_v32  ;;  %v2113_v34 = vld [vmem:[%s2551_s3 + $0x60] sm:$0xff]   ;;  %v2110_v56 = vld [vmem:[%s2551_s3 + $0x10] sm:$0xff]   ;;  %v2111_v2 = vld [vmem:[%s2551_s3 + $0x18] sm:$0xff]  }
   0xd   :  { %1926 = vmatprep.subr.bf16.mxu1 %v2151_v33  ;;  %v2326_v41 = vld [vmem:[%s2552_s2] ss:$0 sm:$0xff] }
   0xe   :  { %v2109_v45 = vld [vmem:[%s2551_s3] sm:$0xff]  }
   0xf   :  { %1812 = vmatpush3.bf16.msra.mxu0 %v2075_v7 }
  0x10   :  { %1813 = vmatprep.subr.bf16.mxu0 %v2076_v8 }
  0x13   :  { %1814 = vmatpush3.bf16.msra.mxu0 %v2077_v9 }
  0x14   :  { %1815 = vmatprep.subr.bf16.mxu0 %v2078_v10 }
  0x17   :  { %1816 = vmatpush3.bf16.msra.mxu0 %v2079_v12  ;;  %v2112_v12 = vld [vmem:[%s2551_s3 + $0x20] sm:$0xff]  }
  0x18   :  { %1817 = vmatprep.subr.bf16.mxu0 %v2080_v13 }
  0x1b   :  { %1818 = vmatpush3.bf16.msra.mxu0 %v2081_v14 }
  0x1c   :  { %1819 = vmatprep.subr.bf16.mxu0 %v2082_v15 }
  0x1f   :  { %1820 = vmatpush3.bf16.msra.mxu0 %v2083_v16 }
  0x20   :  { %1992 = vmatprep.subr.bf16.mxu0 %v2151_v33 }
  0x22   :  { %303 = vmatmul.mubr.bf16.vlgmr.msra.gmra.mrb[0].mxu0 %v2084_v17 }
  0x23   :  { %310 = vmatprep.mubr.bf16.mxu0 %v2087_v18  ;;  %1993 = vmatpush3.bf16.msra.mxu0 %v2113_v34 }
  0x24   :  { %2004 = vmatprep.subr.bf16.mxu0 %v2151_v33 }
  0x2a   :  { %311 = vmatmul.mubr.bf16.gmra.mrb[4].mxu0 %v2089_v19 }
  0x2b   :  { %318 = vmatprep.mubr.bf16.mxu0 %v2090_v20 }
  0x32   :  { %319 = vmatmul.mubr.bf16.gmra.mrb[8].mxu0 %v2092_v21 }
  0x33   :  { %326 = vmatprep.mubr.bf16.mxu0 %v2093_v22 }
  0x3a   :  { %327 = vmatmul.mubr.bf16.gmra.mrb[12].mxu0 %v2095_v23 }
  0x3b   :  { %334 = vmatprep.mubr.bf16.mxu0 %v2096_v24  ;;  %v2114_v24 = vld [vmem:[%s2551_s3 + $0x28] sm:$0xff]  }
  0x42   :  { %335 = vmatmul.mubr.bf16.gmra.mrb[16].mxu0 %v2098_v25 }
  0x43   :  { %342 = vmatprep.mubr.bf16.mxu0 %v2099_v26 }
  0x4a   :  { %343 = vmatmul.mubr.bf16.gmra.mrb[20].mxu0 %v2101_v27 }
  0x4b   :  { %350 = vmatprep.mubr.bf16.mxu0 %v2102_v28 }
  0x52   :  { %351 = vmatmul.mubr.bf16.gmra.mrb[24].mxu0 %v2104_v29 }
  0x53   :  { %358 = vmatprep.mubr.bf16.mxu0 %v2105_v30 }
  0x5a   :  { %359 = vmatmul.mubr.bf16.gmra.mrb[28].mxu0 %v2107_v31 }
  0x5b   :  { %1994 = vmatprep.mubr.msk.bf16.mxu0 %vm2152_vm0, %v2151_v33 }
  0xf5   :  { %v1821_v35 = vpop.f32.mrb[0].mxu0 }
  0xf6   :  { %v1822_v36 = vpop.f32.mrb[1].mxu0 }
  0xf7   :  { %v1823_v37 = vadd.f32 %v1822_v36, %v1821_v35  ;;  %v1824_v38 = vpop.f32.mrb[2].mxu0 }
  0xf8   :  { %v1825_v39 = vpop.f32.mrb[3].mxu0 }
  0xf9   :  { %v1826_v40 = vadd.f32 %v1825_v39, %v1824_v38  ;;  %v305_v47 = vadd.f32 %v1823_v37, %v2326_v41  ;;  %v2115_v37 = vld [vmem:[%s2551_s3 + $0x30] sm:$0xff]  }
  0xfb   :  { %v308_v42 = vadd.f32 %v1826_v40, %v2326_v41  ;;  %v367_v53 = vmax.f32 %v305_v47, 0.0 }
  0xfd   :  { %v368_v43 = vmax.f32 %v308_v42, 0.0  ;;  %v1827_v44 = vpop.f32.mrb[4].mxu0  ;;  %v415_v58 = vpack.c.bf16 %v367_v53, %v367_v53  ;;  %v2116_v53 = vld [vmem:[%s2551_s3 + $0x38] sm:$0xff]  }
  0xfe   :  { %v1828_v46 = vpop.f32.mrb[5].mxu0 }
  0xff   :  { %v416_v48 = vpack.c.bf16 %v368_v43, %v368_v43  ;;  %v1829_v49 = vadd.f32 %v1828_v46, %v1827_v44  ;;  %v1830_v50 = vpop.f32.mrb[6].mxu0 }
 0x100   :  { %v1831_v51 = vpop.f32.mrb[7].mxu0 }
 0x101   :  { %1923 = vmatmul.mubr.msk.bf16.vlgmr.msra.gmra.mrb[0].mxu1 %vm423_vm1, %v416_v48  ;;  %v1832_v52 = vadd.f32 %v1831_v51, %v1830_v50  ;;  %v313_v54 = vadd.f32 %v1829_v49, %v2326_v41  ;;  %v2122_v49 = vld [vmem:[%s2551_s3 + $0x70] sm:$0xff]  }
 0x102   :  { %1927 = vmatpush3.bf16.msra.mxu1 %v2109_v45  ;;  %1928 = vmatprep.mubr.msk.bf16.mxu1 %vm2152_vm0, %v2151_v33 }
 0x103   :  { %1932 = vmatprep.subr.bf16.mxu1 %v2151_v33  ;;  %v369_v62 = vmax.f32 %v313_v54, 0.0  ;;  %v316_v4 = vadd.f32 %v1832_v52, %v2326_v41 }
 0x105   :  { %v1833_v55 = vpop.f32.mrb[8].mxu0  ;;  %v516_v0 = vpack.c.bf16 %v369_v62, %v369_v62  ;;  %v370_v9 = vmax.f32 %v316_v4, 0.0  ;;  %v2118_v4 = vld [vmem:[%s2551_s3 + $0x48] sm:$0xff]  }
 0x106   :  { %v1834_v57 = vpop.f32.mrb[9].mxu0 }
 0x107   :  { %v1835_v59 = vadd.f32 %v1834_v57, %v1833_v55  ;;  %v1836_v60 = vpop.f32.mrb[10].mxu0  ;;  %v567_v14 = vpack.c.bf16 %v370_v9, %v370_v9 }
 0x108   :  { %v1837_v61 = vpop.f32.mrb[11].mxu0 }
 0x109   :  { %1929 = vmatmul.mubr.msk.bf16.vlgmr.msra.gmra.mrb[4].mxu1 %vm423_vm1, %v415_v58  ;;  %v1838_v63 = vadd.f32 %v1837_v61, %v1836_v60  ;;  %v321_v10 = vadd.f32 %v1835_v59, %v2326_v41 }
 0x10a   :  { %1933 = vmatpush3.bf16.msra.mxu1 %v2110_v56  ;;  %1934 = vmatprep.mubr.msk.bf16.mxu1 %vm2152_vm0, %v2151_v33 }
 0x10b   :  { %1938 = vmatprep.subr.bf16.mxu1 %v2151_v33  ;;  %v371_v18 = vmax.f32 %v321_v10, 0.0  ;;  %v324_v26 = vadd.f32 %v1838_v63, %v2326_v41  ;;  %v2120_v10 = vld [vmem:[%s2551_s3 + $0x58] sm:$0xff]  }
 0x10d   :  { %v1839_v1 = vpop.f32.mrb[12].mxu0  ;;  %v618_v22 = vpack.c.bf16 %v371_v18, %v371_v18  ;;  %v372_v32 = vmax.f32 %v324_v26, 0.0 }
 0x10e   :  { %v1840_v3 = vpop.f32.mrb[13].mxu0 }
 0x10f   :  { %v1841_v5 = vadd.f32 %v1840_v3, %v1839_v1  ;;  %v1842_v6 = vpop.f32.mrb[14].mxu0  ;;  %v669_v39 = vpack.c.bf16 %v372_v32, %v372_v32  ;;  %v2117_v1 = vld [vmem:[%s2551_s3 + $0x40] sm:$0xff]  }
 0x110   :  { %v1843_v7 = vpop.f32.mrb[15].mxu0 }
 0x111   :  { %1935 = vmatmul.mubr.msk.bf16.vlgmr.msra.gmra.mrb[8].mxu1 %vm423_vm1, %v516_v0  ;;  %v1844_v8 = vadd.f32 %v1843_v7, %v1842_v6  ;;  %v329_v35 = vadd.f32 %v1841_v5, %v2326_v41  ;;  %v2119_v6 = vld [vmem:[%s2551_s3 + $0x50] sm:$0xff]  }
 0x112   :  { %1939 = vmatpush3.bf16.msra.mxu1 %v2111_v2  ;;  %1940 = vmatprep.mubr.msk.bf16.mxu1 %vm2152_vm0, %v2151_v33 }
 0x113   :  { %1944 = vmatprep.subr.bf16.mxu1 %v2151_v33  ;;  %v373_v44 = vmax.f32 %v329_v35, 0.0  ;;  %v332_v55 = vadd.f32 %v1844_v8, %v2326_v41 }
 0x115   :  { %v1845_v11 = vpop.f32.mrb[16].mxu0  ;;  %v720_v50 = vpack.c.bf16 %v373_v44, %v373_v44  ;;  %v374_v61 = vmax.f32 %v332_v55, 0.0 }
 0x116   :  { %v1846_v13 = vpop.f32.mrb[17].mxu0 }
 0x117   :  { %v1847_v15 = vadd.f32 %v1846_v13, %v1845_v11  ;;  %v1848_v16 = vpop.f32.mrb[18].mxu0  ;;  %v771_v2 = vpack.c.bf16 %v374_v61, %v374_v61 }
 0x118   :  { %v1849_v17 = vpop.f32.mrb[19].mxu0 }
 0x119   :  { %1941 = vmatmul.mubr.msk.bf16.vlgmr.msra.gmra.mrb[12].mxu1 %vm423_vm1, %v567_v14  ;;  %v2359_v19 = vadd.f32 %v1847_v15, %v2326_v41  ;;  %v1850_v20 = vadd.f32 %v1849_v17, %v1848_v16  ;;  %v2123_v15 = vld [vmem:[%s2551_s3 + $0x78] sm:$0xff]  }
 0x11a   :  { %1945 = vmatpush3.bf16.msra.mxu1 %v2112_v12  ;;  %1946 = vmatprep.mubr.msk.bf16.mxu1 %vm2152_vm0, %v2151_v33  ;;  %v2121_v12 = vld [vmem:[%s2551_s3 + $0x68] sm:$0xff]  }
 0x11b   :  { %1950 = vmatprep.subr.bf16.mxu1 %v2151_v33  ;;  %v2365_v21 = vadd.f32 %v1850_v20, %v2326_v41  ;;  %v375_v3 = vmax.f32 %v2359_v19, 0.0  ;;  %v2124_v19 = vld [vmem:[%s2553_s5] sm:$0xff]   ;;  %v2125_v20 = vld [vmem:[%s2553_s5 + $0x10] sm:$0xff]  }
 0x11d   :  { %v1851_v23 = vpop.f32.mrb[20].mxu0  ;;  %v376_v5 = vmax.f32 %v2365_v21, 0.0  ;;  %v2126_v21 = vld [vmem:[%s2553_s5 + $0x8] sm:$0xff]  }
 0x11e   :  { %v1852_v25 = vpop.f32.mrb[21].mxu0 }
 0x11f   :  { %v1853_v27 = vadd.f32 %v1852_v25, %v1851_v23  ;;  %v1854_v28 = vpop.f32.mrb[22].mxu0  ;;  %v873_v7 = vpack.c.bf16 %v376_v5, %v376_v5 }
 0x120   :  { %v1855_v29 = vpop.f32.mrb[23].mxu0 }
 0x121   :  { %1947 = vmatmul.mubr.msk.bf16.vlgmr.msra.gmra.mrb[16].mxu1 %vm423_vm1, %v618_v22  ;;  %v2373_v30 = vadd.f32 %v1853_v27, %v2326_v41  ;;  %v1856_v31 = vadd.f32 %v1855_v29, %v1854_v28  ;;  %v2127_v22 = vld [vmem:[%s2553_s5 + $0x18] sm:$0xff]  }
 0x122   :  { %1951 = vmatpush3.bf16.msra.mxu1 %v2114_v24  ;;  %1952 = vmatprep.mubr.msk.bf16.mxu1 %vm2152_vm0, %v2151_v33 }
 0x123   :  { %1956 = vmatprep.subr.bf16.mxu1 %v2151_v33  ;;  %v2379_v34 = vadd.f32 %v1856_v31, %v2326_v41  ;;  %v377_v8 = vmax.f32 %v2373_v30, 0.0 }
 0x125   :  { %v1857_v36 = vpop.f32.mrb[24].mxu0  ;;  %v924_v9 = vpack.c.bf16 %v377_v8, %v377_v8  ;;  %v378_v11 = vmax.f32 %v2379_v34, 0.0 }
 0x126   :  { %v1858_v38 = vpop.f32.mrb[25].mxu0 }
 0x127   :  { %v1859_v40 = vadd.f32 %v1858_v38, %v1857_v36  ;;  %v1860_v42 = vpop.f32.mrb[26].mxu0  ;;  %v975_v13 = vpack.c.bf16 %v378_v11, %v378_v11 }
 0x128   :  { %v1861_v43 = vpop.f32.mrb[27].mxu0 }
 0x129   :  { %1953 = vmatmul.mubr.msk.bf16.vlgmr.msra.gmra.mrb[20].mxu1 %vm423_vm1, %v669_v39  ;;  %v353_v45 = vadd.f32 %v1859_v40, %v2326_v41  ;;  %v1862_v46 = vadd.f32 %v1861_v43, %v1860_v42 }
 0x12a   :  { %1957 = vmatpush3.bf16.msra.mxu1 %v2115_v37  ;;  %1958 = vmatprep.mubr.msk.bf16.mxu1 %vm2152_vm0, %v2151_v33 }
 0x12b   :  { %1962 = vmatprep.subr.bf16.mxu1 %v2151_v33  ;;  %v379_v47 = vmax.f32 %v353_v45, 0.0  ;;  %v2391_v48 = vadd.f32 %v1862_v46, %v2326_v41 }
 0x12d   :  { %v1026_v51 = vpack.c.bf16 %v379_v47, %v379_v47  ;;  %v1863_v52 = vpop.f32.mrb[28].mxu0  ;;  %v380_v14 = vmax.f32 %v2391_v48, 0.0 }
 0x12e   :  { %v1864_v54 = vpop.f32.mrb[29].mxu0 }
 0x12f   :  { %v1865_v56 = vadd.f32 %v1864_v54, %v1863_v52  ;;  %1995 = vmatmul.mubr.msk.bf16.vlgmr.msra.gmra.mrb[32].mxu0 %vm423_vm1, %v1026_v51  ;;  %v1866_v57 = vpop.f32.mrb[30].mxu0  ;;  %v1077_v16 = vpack.c.bf16 %v380_v14, %v380_v14 }
 0x130   :  { %v1867_v58 = vpop.f32.mrb[31].mxu0  ;;  %2005 = vmatpush3.bf16.msra.mxu0 %v2122_v49  ;;  %2006 = vmatprep.mubr.msk.bf16.mxu0 %vm2152_vm0, %v2151_v33 }
 0x131   :  { %1959 = vmatmul.mubr.msk.bf16.vlgmr.msra.gmra.mrb[24].mxu1 %vm423_vm1, %v720_v50  ;;  %v361_v59 = vadd.f32 %v1865_v56, %v2326_v41  ;;  %v1868_v60 = vadd.f32 %v1867_v58, %v1866_v57  ;;  %2016 = vmatprep.subr.bf16.mxu0 %v2151_v33 }
 0x132   :  { %1963 = vmatpush3.bf16.msra.mxu1 %v2116_v53  ;;  %1964 = vmatprep.mubr.msk.bf16.mxu1 %vm2152_vm0, %v2151_v33 }
 0x133   :  { %1968 = vmatprep.subr.bf16.mxu1 %v2151_v33  ;;  %v381_v62 = vmax.f32 %v361_v59, 0.0  ;;  %v364_v63 = vadd.f32 %v1868_v60, %v2326_v41  ;;  %v822_v41 = vpack.c.bf16 %v375_v3, %v375_v3 }
 0x135   :  { %v1128_v0 = vpack.c.bf16 %v381_v62, %v381_v62  ;;  %v382_v17 = vmax.f32 %v364_v63, 0.0 }
 0x137   :  { %2007 = vmatmul.mubr.msk.bf16.vlgmr.msra.gmra.mrb[36].mxu0 %vm423_vm1, %v1128_v0  ;;  %v1179_v18 = vpack.c.bf16 %v382_v17, %v382_v17 }
 0x138   :  { %2020 = vmatprep.mubr.msk.bf16.mxu0 %vm2152_vm0, %v2151_v33  ;;  %2017 = vmatpush3.bf16.msra.mxu0 %v2125_v20 }
 0x139   :  { %1965 = vmatmul.mubr.msk.bf16.vlgmr.msra.gmra.mrb[28].mxu1 %vm423_vm1, %v771_v2  ;;  %2018 = vmatprep.subr.bf16.mxu0 %v2151_v33 }
 0x13a   :  { %1969 = vmatpush3.bf16.msra.mxu1 %v2117_v1  ;;  %1970 = vmatprep.mubr.msk.bf16.mxu1 %vm2152_vm0, %v2151_v33 }
 0x13b   :  { %1974 = vmatprep.subr.bf16.mxu1 %v2151_v33 }
 0x13c   :  { %2019 = vmatpush3.bf16.msra.mxu0 %v2127_v22 }
 0x13d   :  { %2032 = vmatprep.subr.bf16.mxu0 %v2151_v33 }
 0x141   :  { %1971 = vmatmul.mubr.msk.bf16.vlgmr.msra.gmra.mrb[32].mxu1 %vm423_vm1, %v822_v41 }
 0x142   :  { %1975 = vmatpush3.bf16.msra.mxu1 %v2118_v4  ;;  %1976 = vmatprep.mubr.msk.bf16.mxu1 %vm2152_vm0, %v2151_v33 }
 0x143   :  { %1980 = vmatprep.subr.bf16.mxu1 %v2151_v33 }
 0x149   :  { %1977 = vmatmul.mubr.msk.bf16.vlgmr.msra.gmra.mrb[36].mxu1 %vm423_vm1, %v873_v7 }
 0x14a   :  { %1981 = vmatpush3.bf16.msra.mxu1 %v2119_v6  ;;  %1982 = vmatprep.mubr.msk.bf16.mxu1 %vm2152_vm0, %v2151_v33 }
 0x14b   :  { %1986 = vmatprep.subr.bf16.mxu1 %v2151_v33 }
 0x151   :  { %1983 = vmatmul.mubr.msk.bf16.vlgmr.msra.gmra.mrb[40].mxu1 %vm423_vm1, %v924_v9 }
 0x152   :  { %1987 = vmatpush3.bf16.msra.mxu1 %v2120_v10  ;;  %1988 = vmatprep.mubr.msk.bf16.mxu1 %vm2152_vm0, %v2151_v33 }
 0x153   :  { %1998 = vmatprep.subr.bf16.mxu1 %v2151_v33 }
 0x159   :  { %1989 = vmatmul.mubr.msk.bf16.vlgmr.msra.gmra.mrb[44].mxu1 %vm423_vm1, %v975_v13 }
 0x15a   :  { %1999 = vmatpush3.bf16.msra.mxu1 %v2121_v12  ;;  %2000 = vmatprep.mubr.msk.bf16.mxu1 %vm2152_vm0, %v2151_v33 }
 0x15b   :  { %2010 = vmatprep.subr.bf16.mxu1 %v2151_v33 }
 0x161   :  { %2001 = vmatmul.mubr.msk.bf16.vlgmr.msra.gmra.mrb[48].mxu1 %vm423_vm1, %v1077_v16 }
 0x162   :  { %2011 = vmatpush3.bf16.msra.mxu1 %v2123_v15  ;;  %2012 = vmatprep.mubr.msk.bf16.mxu1 %vm2152_vm0, %v2151_v33 }
 0x163   :  { %2024 = vmatprep.subr.bf16.mxu1 %v2151_v33 }
 0x169   :  { %2013 = vmatmul.mubr.msk.bf16.vlgmr.msra.gmra.mrb[52].mxu1 %vm423_vm1, %v1179_v18 }
 0x16a   :  { %2028 = vmatprep.mubr.msk.bf16.mxu1 %vm2152_vm0, %v2151_v33  ;;  %2025 = vmatpush3.bf16.msra.mxu1 %v2124_v19 }
 0x16b   :  { %2026 = vmatprep.subr.bf16.mxu1 %v2151_v33 }
 0x16e   :  { %2027 = vmatpush3.bf16.msra.mxu1 %v2126_v21 }
 0x16f   :  { %2040 = vmatprep.subr.bf16.mxu1 %v2151_v33 }
 0x1d4   :  { %v461_v23 = vpop.f32.mrb[0].mxu1 }
 0x1d5   :  { %v1924_v24 = vpop.f32.mrb[1].mxu1 }
 0x1d6   :  { %v464_v25 = vpop.f32.mrb[2].mxu1 }
 0x1d7   :  { %v1925_v26 = vpop.f32.mrb[3].mxu1 }
 0x1dc   :  { %v510_v27 = vpop.f32.mrb[4].mxu1 }
 0x1dd   :  { %v511_v28 = vadd.f32 %v510_v27, %v461_v23  ;;  %v1930_v29 = vpop.f32.mrb[5].mxu1 }
 0x1de   :  { %v513_v30 = vpop.f32.mrb[6].mxu1 }
 0x1df   :  { %v1931_v31 = vpop.f32.mrb[7].mxu1 }
 0x1e4   :  { %v560_v32 = vpop.f32.mrb[8].mxu1 }
 0x1e5   :  { %v566_v34 = vadd.f32 %v560_v32, %v511_v28  ;;  %v1936_v35 = vpop.f32.mrb[9].mxu1 }
 0x1e6   :  { %v563_v36 = vpop.f32.mrb[10].mxu1 }
 0x1e7   :  { %v1937_v37 = vpop.f32.mrb[11].mxu1  ;;  %v1774_v36 = vld [vmem:[%s2554_s4] ss:$0 sm:$0xff] }
 0x1ec   :  { %v611_v38 = vpop.f32.mrb[12].mxu1 }
 0x1ed   :  { %v617_v39 = vadd.f32 %v611_v38, %v566_v34  ;;  %v1942_v40 = vpop.f32.mrb[13].mxu1 }
 0x1ee   :  { %v614_v42 = vpop.f32.mrb[14].mxu1 }
 0x1ef   :  { %v1943_v43 = vpop.f32.mrb[15].mxu1 }
 0x1f4   :  { %v662_v44 = vpop.f32.mrb[16].mxu1 }
 0x1f5   :  { %v668_v45 = vadd.f32 %v662_v44, %v617_v39  ;;  %v1948_v46 = vpop.f32.mrb[17].mxu1  ;;  %v2128_v44 = vld [vmem:[%s2553_s5 + $0x30] sm:$0xff]  }
 0x1f6   :  { %v665_v47 = vpop.f32.mrb[18].mxu1  ;;  %v2129_v46 = vld [vmem:[%s2553_s5 + $0x20] sm:$0xff]  }
 0x1f7   :  { %v1949_v48 = vpop.f32.mrb[19].mxu1 }
 0x1f8   :  { %v2130_v48 = vld [vmem:[%s2553_s5 + $0x38] sm:$0xff]  }
 0x1fc   :  { %v713_v49 = vpop.f32.mrb[20].mxu1 }
 0x1fd   :  { %v719_v50 = vadd.f32 %v713_v49, %v668_v45  ;;  %v1954_v51 = vpop.f32.mrb[21].mxu1  ;;  %v2131_v49 = vld [vmem:[%s2553_s5 + $0x28] sm:$0xff]  }
 0x1fe   :  { %v716_v52 = vpop.f32.mrb[22].mxu1 }
 0x1ff   :  { %v1955_v53 = vpop.f32.mrb[23].mxu1  ;;  %v2132_v52 = vld [vmem:[%s2555_s7] sm:$0xff]  }
 0x200   :  { %v2133_v53 = vld [vmem:[%s2555_s7 + $0x8] sm:$0xff]  }
 0x202   :  { %v1070_v54 = vpop.f32.mrb[32].mxu0 }
 0x203   :  { %v1996_v55 = vpop.f32.mrb[33].mxu0 }
 0x204   :  { %v764_v56 = vpop.f32.mrb[24].mxu1  ;;  %v1073_v57 = vpop.f32.mrb[34].mxu0 }
 0x205   :  { %v770_v58 = vadd.f32 %v764_v56, %v719_v50  ;;  %v1960_v59 = vpop.f32.mrb[25].mxu1  ;;  %v1997_v60 = vpop.f32.mrb[35].mxu0 }
 0x206   :  { %v767_v61 = vpop.f32.mrb[26].mxu1 }
 0x207   :  { %v1961_v62 = vpop.f32.mrb[27].mxu1 }
 0x20a   :  { %v1172_v63 = vpop.f32.mrb[36].mxu0 }
 0x20b   :  { %v2008_v0 = vpop.f32.mrb[37].mxu0 }
 0x20c   :  { %v815_v1 = vpop.f32.mrb[28].mxu1  ;;  %v1175_v2 = vpop.f32.mrb[38].mxu0 }
 0x20d   :  { %v821_v3 = vadd.f32 %v815_v1, %v770_v58  ;;  %v1966_v41 = vpop.f32.mrb[29].mxu1  ;;  %v2009_v4 = vpop.f32.mrb[39].mxu0 }
 0x20e   :  { %v818_v5 = vpop.f32.mrb[30].mxu1 }
 0x20f   :  { %v1967_v6 = vpop.f32.mrb[31].mxu1  ;;  %v1787_v5 = vld [vmem:[%s2556_s6] ss:$0 sm:$0xff] }
 0x214   :  { %v866_v7 = vpop.f32.mrb[32].mxu1 }
 0x215   :  { %v872_v8 = vadd.f32 %v866_v7, %v821_v3  ;;  %v1972_v9 = vpop.f32.mrb[33].mxu1 }
 0x216   :  { %v869_v10 = vpop.f32.mrb[34].mxu1 }
 0x217   :  { %v1973_v11 = vpop.f32.mrb[35].mxu1 }
 0x21c   :  { %v917_v12 = vpop.f32.mrb[36].mxu1 }
 0x21d   :  { %v923_v13 = vadd.f32 %v917_v12, %v872_v8  ;;  %v1978_v14 = vpop.f32.mrb[37].mxu1  ;;  %v2134_v12 = vld [vmem:[%s2557_s9] sm:$0xff]  }
 0x21e   :  { %v920_v15 = vpop.f32.mrb[38].mxu1  ;;  %v2136_v14 = vld [vmem:[%s2557_s9 + $0x10] sm:$0xff]  }
 0x21f   :  { %v1979_v16 = vpop.f32.mrb[39].mxu1  ;;  %v1788_v15 = vld [vmem:[%s2558_s8] ss:$0 sm:$0xff] }
 0x224   :  { %v968_v17 = vpop.f32.mrb[40].mxu1 }
 0x225   :  { %v974_v18 = vadd.f32 %v968_v17, %v923_v13  ;;  %v1984_v19 = vpop.f32.mrb[41].mxu1  ;;  %v2135_v13 = vld [vmem:[%s2557_s9 + $0x8] sm:$0xff]  }
 0x226   :  { %v971_v20 = vpop.f32.mrb[42].mxu1 }
 0x227   :  { %v1985_v21 = vpop.f32.mrb[43].mxu1 }
 0x22c   :  { %v1019_v22 = vpop.f32.mrb[44].mxu1 }
 0x22d   :  { %v1025_v23 = vadd.f32 %v1019_v22, %v974_v18  ;;  %v1990_v24 = vpop.f32.mrb[45].mxu1 }
 0x22e   :  { %v1022_v25 = vpop.f32.mrb[46].mxu1 }
 0x22f   :  { %v1076_v26 = vadd.f32 %v1070_v54, %v1025_v23  ;;  %v1991_v27 = vpop.f32.mrb[47].mxu1 }
 0x234   :  { %v1121_v28 = vpop.f32.mrb[48].mxu1 }
 0x235   :  { %v1127_v29 = vadd.f32 %v1121_v28, %v1076_v26  ;;  %v2002_v30 = vpop.f32.mrb[49].mxu1  ;;  %v1793_v26 = vld [vmem:[%s2559_s10] ss:$0 sm:$0xff] }
 0x236   :  { %v1124_v31 = vpop.f32.mrb[50].mxu1 }
 0x237   :  { %v1178_v32 = vadd.f32 %v1172_v63, %v1127_v29  ;;  %v2003_v34 = vpop.f32.mrb[51].mxu1 }
 0x23c   :  { %v1223_v35 = vpop.f32.mrb[52].mxu1 }
 0x23d   :  { %v1229_v37 = vadd.f32 %v1223_v35, %v1178_v32  ;;  %v2014_v38 = vpop.f32.mrb[53].mxu1 }
 0x23e   :  { %v1226_v39 = vpop.f32.mrb[54].mxu1 }
 0x23f   :  { %v1237_v40 = vadd.f32 %v1774_v36, %v1229_v37  ;;  %v2015_v42 = vpop.f32.mrb[55].mxu1 }
 0x241   :  { %v1238_v43 = vmax.f32 %v1237_v40, 0.0 }
 0x243   :  { %v1255_v45 = vpack.c.bf16 %v1238_v43, %v1238_v43 }
 0x245   :  { %v1257_v47 = vrot.slane %v1255_v45, 1  ;;  %2029 = vmatmul.mubr.msk.bf16.vlgmr.msra.gmra.mrb[56].mxu1 %vm1270_vm2, %v1255_v45  ;;  %v1426_v50 = vrot.slane %v1255_v45, 3  ;;  %v1369_v51 = vrot.slane %v1255_v45, 2 }
 0x246   :  { %2041 = vmatpush3.bf16.msra.mxu1 %v2128_v44  ;;  %2044 = vmatprep.mubr.msk.bf16.mxu1 %vm2152_vm0, %v2151_v33 }
 0x247   :  { %2021 = vmatmul.mubr.msk.bf16.vlgmr.msra.gmra.mrb[40].mxu0 %vm1270_vm2, %v1257_v47  ;;  %2042 = vmatprep.subr.bf16.mxu1 %v2151_v33 }
 0x248   :  { %2033 = vmatpush3.bf16.msra.mxu0 %v2129_v46  ;;  %2036 = vmatprep.mubr.msk.bf16.mxu0 %vm2152_vm0, %v2151_v33 }
 0x249   :  { %2034 = vmatprep.subr.bf16.mxu0 %v2151_v33 }
 0x24a   :  { %2043 = vmatpush3.bf16.msra.mxu1 %v2130_v48  ;;  %v1641_v48 = vlaneseq }
 0x24b   :  { %2056 = vmatprep.subr.bf16.mxu1 %v2151_v33 }
 0x24c   :  { %2035 = vmatpush3.bf16.msra.mxu0 %v2131_v49 }
 0x24d   :  { %2045 = vmatmul.mubr.msk.bf16.vlgmr.msra.gmra.mrb[60].mxu1 %vm1270_vm2, %v1426_v50  ;;  %2048 = vmatprep.subr.bf16.mxu0 %v2151_v33 }
 0x24e   :  { %2062 = vmatprep.mubr.msk.bf16.mxu1 %vm2152_vm0, %v2151_v33  ;;  %2057 = vmatpush3.bf16.msra.mxu1 %v2134_v12 }
 0x24f   :  { %2037 = vmatmul.mubr.msk.bf16.vlgmr.msra.gmra.mrb[44].mxu0 %vm1270_vm2, %v1369_v51  ;;  %2058 = vmatprep.subr.bf16.mxu1 %v2151_v33 }
 0x250   :  { %2052 = vmatprep.mubr.msk.bf16.mxu0 %vm2152_vm0, %v2151_v33  ;;  %2049 = vmatpush3.bf16.msra.mxu0 %v2132_v52  ;;  %v1642_v52 = vand.u32 127, %v1641_v48 }
 0x251   :  { %2050 = vmatprep.subr.bf16.mxu0 %v2151_v33 }
 0x252   :  { %2059 = vmatpush3.bf16.msra.mxu1 %v2135_v13  ;;  %vm1660_vm5 = vcmp.ge.s32.totalorder %v1642_v52, 4  ;;  %vm1661_vm6 = vcmp.lt.s32.totalorder %v1642_v52, 8  ;;  %vm1656_vm7 = vcmp.eq.s32.totalorder %v1642_v52, 0  ;;  %vm1643_vm9 = vcmp.ge.s32.totalorder %v1642_v52, 8 }
 0x253   :  { %2060 = vmatprep.subr.bf16.mxu1 %v2151_v33  ;;  %vm1662_vm8 = vmand %vm1660_vm5, %vm1661_vm6  ;;  %vm1644_vm10 = vcmp.lt.s32.totalorder %v1642_v52, 9  ;;  %vm1649_vm11 = vcmp.eq.s32.totalorder %v1642_v52, 1  ;;  %vm1685_vm13 = vcmp.eq.s32.totalorder %v1642_v52, 2  ;;  %vm1689_vm14 = vcmp.eq.s32.totalorder %v1642_v52, 3 }
 0x254   :  { %2051 = vmatpush3.bf16.msra.mxu0 %v2133_v53  ;;  %vm1645_vm12 = vmand %vm1643_vm9, %vm1644_vm10 }
 0x256   :  { %2061 = vmatpush3.bf16.msra.mxu1 %v2136_v14 }
 0x318   :  { %v1363_v54 = vpop.f32.mrb[56].mxu1 }
 0x319   :  { %v2030_v55 = vpop.f32.mrb[57].mxu1 }
 0x31a   :  { %v1308_v56 = vpop.f32.mrb[40].mxu0  ;;  %v1366_v57 = vpop.f32.mrb[58].mxu1 }
 0x31b   :  { %v1364_v58 = vadd.f32 %v1363_v54, %v1308_v56  ;;  %v2022_v59 = vpop.f32.mrb[41].mxu0  ;;  %v2031_v60 = vpop.f32.mrb[59].mxu1  ;;  %v1800_v56 = vsel %vm1656_vm7, 1.0, %v2151_v33  ;;  %v1801_v57 = vsel %vm1662_vm8, 1.0, %v2151_v33 }
 0x31c   :  { %v1311_v61 = vpop.f32.mrb[42].mxu0  ;;  %v1799_v59 = vsel %vm1649_vm11, 1.0, %v2151_v33  ;;  %v1665_v60 = vadd.f32 %v1801_v57, %v1800_v56 }
 0x31d   :  { %v2023_v62 = vpop.f32.mrb[43].mxu0 }
 0x31e   :  { %v1798_v62 = vsel %vm1645_vm12, 1.0, %v2151_v33 }
 0x320   :  { %v1476_v63 = vpop.f32.mrb[60].mxu1 }
 0x321   :  { %v2046_v0 = vpop.f32.mrb[61].mxu1 }
 0x322   :  { %v1419_v1 = vpop.f32.mrb[44].mxu0  ;;  %v1479_v2 = vpop.f32.mrb[62].mxu1  ;;  %v1804_v0 = vsel %vm1689_vm14, 1.0, %v2151_v33 }
 0x323   :  { %v1425_v3 = vadd.f32 %v1419_v1, %v1364_v58  ;;  %v2038_v41 = vpop.f32.mrb[45].mxu0  ;;  %v2047_v4 = vpop.f32.mrb[63].mxu1 }
 0x324   :  { %v1422_v6 = vpop.f32.mrb[46].mxu0 }
 0x325   :  { %v1482_v7 = vadd.f32 %v1476_v63, %v1425_v3  ;;  %v2039_v8 = vpop.f32.mrb[47].mxu0  ;;  %v1803_v63 = vsel %vm1685_vm13, 1.0, %v2151_v33 }
 0x326   :  { %v1692_v41 = vadd.f32 %v1804_v0, %v1803_v63 }
 0x327   :  { %v1490_v9 = vadd.f32 %v1787_v5, %v1482_v7 }
 0x329   :  { %v1491_v10 = vmax.f32 %v1490_v9, 0.0 }
 0x32b   :  { %v1492_v11 = vpack.c.bf16 %v1491_v10, %v1491_v10 }
 0x32d   :  { %2053 = vmatmul.mubr.msk.bf16.vlgmr.msra.gmra.mrb[48].mxu0 %vm1270_vm2, %v1492_v11 }
 0x400   :  { %v1553_v16 = vpop.f32.mrb[48].mxu0 }
 0x401   :  { %v1554_v17 = vadd.f32 %v1788_v15, %v1553_v16  ;;  %v2054_v18 = vpop.f32.mrb[49].mxu0 }
 0x402   :  { %v1556_v19 = vpop.f32.mrb[50].mxu0 }
 0x403   :  { %v1792_v20 = vmul.f32 -1.442695, %v1554_v17  ;;  %v2055_v21 = vpop.f32.mrb[51].mxu0 }
 0x405   :  { %2137 = vpow2.f32 %v1792_v20 }
 0x40f   :  { %v2138_v22 = vpop.eup %2137 }
 0x410   :  { %v1562_v23 = vadd.f32 1.0, %v2138_v22 }
 0x412   :  { %2139 = vrcp.f32 %v1562_v23 }
 0x41c   :  { %v2140_v24 = vpop.eup %2139 }
 0x41d   :  { %v1565_v25 = vpack.c.bf16 %v2140_v24, %v2140_v24 }
 0x41f   :  { %2063 = vmatmul.mubr.msk.bf16.vlgmr.msra.gmra.mrb[64].mxu1 %vm1597_vm3, %v1565_v25 }
 0x4f2   :  { %v1635_v27 = vpop.f32.mrb[64].mxu1 }
 0x4f3   :  { %v1636_v28 = vadd.f32 %v1793_v26, %v1635_v27  ;;  %v2064_v29 = vpop.f32.mrb[65].mxu1 }
 0x4f4   :  { %v1638_v30 = vpop.f32.mrb[66].mxu1 }
 0x4f5   :  { %v1675_v31 = vsel %vm1674_vm4, %v1636_v28, -inf  ;;  %v2065_v32 = vpop.f32.mrb[67].mxu1  ;;  %v1802_v43 = vmul.f32 -1.442695, %v1636_v28  ;;  %v1648_v2 = vmul.f32 %v1798_v62, %v1636_v28 }
 0x4f6   :  { %v1676_v34 = vrot.slane %v1675_v31, 4 }
 0x4f8   :  { %v1677_v35 = vmax.f32 %v1675_v31, %v1676_v34 }
 0x4fa   :  { %v1678_v36 = vrot.slane %v1677_v35, 2 }
 0x4fc   :  { %v1679_v37 = vmax.f32 %v1677_v35, %v1678_v36 }
 0x4fe   :  { %v1680_v38 = vrot.slane %v1679_v37, 1 }
 0x500   :  { %v1681_v39 = vmax.f32 %v1679_v37, %v1680_v38 }
 0x502   :  { %v1682_v40 = vsub.f32 %v1636_v28, %v1681_v39 }
 0x504   :  { %v1683_v42 = vmul.f32 1.442695, %v1682_v40 }
 0x506   :  { %2141 = vpow2.f32 %v1683_v42 }
 0x507   :  { %2143 = vpow2.f32 %v1802_v43 }
 0x508   :  { %2145 = vtanh.f32 %v1636_v28 }
 0x510   :  { %v2142_v44 = vpop.eup %2141 }
 0x511   :  { %v1693_v45 = vsel %vm1674_vm4, %v2142_v44, 0.0  ;;  %v2144_v47 = vpop.eup %2143 }
 0x512   :  { %v1694_v46 = vrot.slane %v1693_v45, 4  ;;  %v1669_v50 = vadd.f32 1.0, %v2144_v47  ;;  %v2146_v58 = vpop.eup %2145 }
 0x513   :  { %v1654_v1 = vmul.f32 %v2146_v58, %v1799_v59 }
 0x514   :  { %v1695_v49 = vadd.f32 %v1694_v46, %v1693_v45  ;;  %2147 = vrcp.f32 %v1669_v50 }
 0x515   :  { %v1655_v5 = vadd.f32 %v1654_v1, %v1648_v2 }
 0x516   :  { %v1696_v51 = vrot.slane %v1695_v49, 2 }
 0x518   :  { %v1697_v53 = vadd.f32 %v1696_v51, %v1695_v49 }
 0x51a   :  { %v1698_v54 = vrot.slane %v1697_v53, 1 }
 0x51c   :  { %v1699_v55 = vadd.f32 %v1698_v54, %v1697_v53 }
 0x51e   :  { %2149 = vrcp.f32 %v1699_v55  ;;  %v2148_v61 = vpop.eup %2147 }
 0x51f   :  { %v1672_v3 = vmul.f32 %v2148_v61, %v1665_v60 }
 0x521   :  { %v1673_v7 = vadd.f32 %v1672_v3, %v1655_v5 }
 0x528   :  { %v2150_v4 = vpop.eup %2149 }
 0x529   :  { %v1701_v6 = vmul.f32 %v2150_v4, %v2142_v44 }
 0x52b   :  { %v1702_v8 = vmul.f32 %v1701_v6, %v1692_v41 }
 0x52d   :  { %v1703_v9 = vadd.f32 %v1702_v8, %v1673_v7 }
 0x52f   :  { %1704 = vst [vmem:[%s2560_s11] sm:$0x3] %v1703_v9 }

</bundles_post_ra>
